<compile_context>
chip_gen: v7x
topology: tpu7x:2x2x1
jax: 0.10.0
libtpu: 0.0.40
codegen_flags: <defaults>
</compile_context>

<pallas_src>
import math
from functools import partial

import jax
import jax.numpy as jnp
import numpy as np
from jax import lax
from jax.experimental import pallas as pl
from jax.experimental.pallas import tpu as pltpu


def sinusoidal_pos_enc(max_len: int, d_model: int, dtype=jnp.float32):
    """Deterministic sinusoidal PE table (same formula as wenet PositionalEncoding)."""
    position = np.arange(max_len, dtype=np.float32)[:, None]
    div_term = np.exp(
        np.arange(0, d_model, 2, dtype=np.float32) * -(math.log(10000.0) / d_model)
    )
    pe = np.zeros((max_len, d_model), dtype=np.float32)
    pe[:, 0::2] = np.sin(position * div_term)
    pe[:, 1::2] = np.cos(position * div_term)
    return jnp.asarray(pe, dtype=dtype)


def _round_up(x: int, m: int) -> int:
    return ((x + m - 1) // m) * m


def _pick_t_blk(T: int, requested: int) -> int:
    """Token-chunk size: a multiple of 8, at most round_up(T, 8)."""
    t = min(requested, _round_up(T, 8))
    return _round_up(max(t, 8), 8)


def _vmem_limit_bytes(V_pad, D, t_blk, table_itemsize, out_itemsize, table_bufs):
    """Generation-aware VMEM cap (<= ~75% of physical VMEM per TensorCore)."""
    try:
        cap = int(pltpu.get_tpu_info().vmem_capacity_bytes)
    except Exception:
        cap = 64 << 20  # be conservative (v7x per-TC) if the query is unavailable
    table_b = table_bufs * V_pad * D * table_itemsize
    pe_b = 2 * t_blk * D * 4
    ids_b = 2 * t_blk * 4
    out_b = 2 * t_blk * D * out_itemsize
    tmp_b = t_blk * V_pad * 4 + 2 * t_blk * D * 4  # one-hot + f32 intermediates
    need = table_b + pe_b + ids_b + out_b + tmp_b + (2 << 20)
    return int(min(max(need, 16 << 20), int(0.75 * cap)))


def _embed_kernel(table_ref, ids_ref, pe_ref, x_ref, *, V_pad, xscale):
    # table_ref: (V_pad, D)   VMEM-resident embedding table (zero-padded rows)
    # ids_ref:   (1, t_blk, 1) int32 token ids for this chunk (tokens on sublanes)
    # pe_ref:    (t_blk, D)   PE rows for this chunk (f32)
    # x_ref:     (1, t_blk, D) output tile
    t_blk = ids_ref.shape[1]
    tbl = table_ref[...]                                            # (V_pad, D)
    ids_col = ids_ref[0]                                            # (t_blk, 1) int32
    vocab_iota = lax.broadcasted_iota(jnp.int32, (t_blk, V_pad), 1)
    # One-hot gather on the MXU.  Out-of-range ids match no column (or a zero
    # pad row), yielding a zero embedding row instead of OOB reads.
    onehot = (vocab_iota == ids_col).astype(tbl.dtype)              # (t_blk, V_pad)
    rows = jnp.dot(onehot, tbl, preferred_element_type=jnp.float32)  # (t_blk, D) f32
    y = rows * xscale + pe_ref[...].astype(jnp.float32)
    x_ref[0, :, :] = y.astype(x_ref.dtype)                          # one full-tile store


def embed_no_subsampling(ids, x_mask, embed_table, pos_table, offset=0, t_blk=256):
    """Forward pass of EmbedinigNoSubsampling as a Pallas TPU kernel.

    ids:         (B, T) integer token indices
    x_mask:      (B, 1, T) bool  (returned unchanged)
    embed_table: (V, D)          (nn.Embedding weight)
    pos_table:   (L, D)          (sinusoidal PE table, L >= offset + T)
    offset:      python int or traced scalar
    Returns (x, pos_emb, x_mask) with x: (B, T, D), pos_emb: (1, T, D).
    """
    B, T = ids.shape
    V, D = embed_table.shape
    L = pos_table.shape[0]
    xscale = float(math.sqrt(D))
    out_dtype = embed_table.dtype

    if isinstance(offset, int):
        # The reference module asserts; dynamic_slice would clamp silently.
        assert 0 <= offset and offset + T <= L, "pos_enc table too short for offset+T"

    t_blk = _pick_t_blk(T, t_blk)
    n_chunks = pl.cdiv(T, t_blk)
    T_pad = n_chunks * t_blk

    # Pad the vocab axis to a lane-tile multiple: MXU-friendly contraction dim.
    V_pad = _round_up(V, 128)
    table_p = embed_table if V_pad == V else jnp.pad(embed_table, ((0, V_pad - V), (0, 0)))

    # pos_emb slice done outside the kernel; the padded copy feeds the fused add.
    pe = lax.dynamic_slice_in_dim(pos_table, offset, T, axis=0).astype(jnp.float32)
    pe_p = pe if T_pad == T else jnp.pad(pe, ((0, T_pad - T), (0, 0)))

    ids_i = ids.astype(jnp.int32)
    if T_pad != T:
        ids_i = jnp.pad(ids_i, ((0, 0), (0, T_pad - T)))  # pad ids hit row 0, masked on store
    ids_col = ids_i[:, :, None]  # (B, T_pad, 1): tokens map to sublanes in-kernel

    kernel = partial(_embed_kernel, V_pad=V_pad, xscale=xscale)

    def build_and_run(single_buffer_table: bool):
        table_map = lambda j, b: (0, 0)           # constant -> fetched once, stays in VMEM
        if single_buffer_table:
            table_spec = pl.BlockSpec((V_pad, D), table_map, pipeline_mode=pl.Buffered(1))
            table_bufs = 1
        else:
            table_spec = pl.BlockSpec((V_pad, D), table_map)
            table_bufs = 2
        vmem_limit = _vmem_limit_bytes(
            V_pad, D, t_blk,
            jnp.dtype(embed_table.dtype).itemsize,
            jnp.dtype(out_dtype).itemsize,
            table_bufs,
        )
        return pl.pallas_call(
            kernel,
            grid=(n_chunks, B),
            in_specs=[
                table_spec,
                # chunk ids: (1, t_blk, 1) VMEM block, no SMEM scalar prefetch
                pl.BlockSpec((1, t_blk, 1), lambda j, b: (b, j, 0)),
                # PE rows for this chunk: constant across the inner batch axis
                pl.BlockSpec((t_blk, D), lambda j, b: (j, 0)),
            ],
            out_specs=pl.BlockSpec((1, t_blk, D), lambda j, b: (b, j, 0)),
            out_shape=jax.ShapeDtypeStruct((B, T, D), out_dtype),
            compiler_params=pltpu.CompilerParams(
                dimension_semantics=("parallel", "parallel"),
                vmem_limit_bytes=vmem_limit,
            ),
        )(table_p, ids_col, pe_p)

    try:
        x = build_and_run(True)
    except Exception:
        # Fallback if this JAX build rejects pipeline_mode=pl.Buffered(1).
        x = build_and_run(False)

    pos_emb = pe[None, :, :].astype(pos_table.dtype)  # (1, T, D)
    # Dropout(dropout_rate) is identity in eval mode; x_mask is returned untouched.
    return x, pos_emb, x_mask


if __name__ == "__main__":
    # Small deterministic setup consistent with the module's __init__:
    # Embedding(idim, odim) + sinusoidal pos_enc_class.
    idim = 50   # vocab size
    odim = 32   # model dim
    B, T = 2, 8

    key = jax.random.PRNGKey(0)
    k_emb, k_ids, k_ids2 = jax.random.split(key, 3)

    embed_table = jax.random.normal(k_emb, (idim, odim), dtype=jnp.float32)
    pos_table = sinusoidal_pos_enc(64, odim)
    xscale = math.sqrt(odim)

    def reference(ids_, off_, T_):
        ref_pe = pos_table[off_: off_ + T_][None, :, :]
        return jnp.take(embed_table, ids_, axis=0) * xscale + ref_pe, ref_pe

    # --- case 1: basic, offset = 0 ---
    ids = jax.random.randint(k_ids, (B, T), 0, idim, dtype=jnp.int32)
    x_mask = jnp.ones((B, 1, T), dtype=jnp.bool_)
    x, pos_emb, mask_out = embed_no_subsampling(ids, x_mask, embed_table, pos_table, 0)
    jax.block_until_ready((x, pos_emb, mask_out))

    ref_x, ref_pe = reference(ids, 0, T)
    assert x.shape == (B, T, odim)
    assert pos_emb.shape == (1, T, odim)
    assert mask_out.shape == (B, 1, T)
    np.testing.assert_allclose(np.asarray(x), np.asarray(ref_x), rtol=1e-5, atol=1e-5)
    np.testing.assert_allclose(np.asarray(pos_emb), np.asarray(ref_pe), rtol=1e-5, atol=1e-5)

    # --- case 2: ragged chunking (T not a multiple of t_blk) + nonzero offset ---
    T2, off2 = 12, 3
    ids2 = jax.random.randint(k_ids2, (B, T2), 0, idim, dtype=jnp.int32)
    x_mask2 = jnp.ones((B, 1, T2), dtype=jnp.bool_)
    x2, pos_emb2, _ = embed_no_subsampling(ids2, x_mask2, embed_table, pos_table, off2, t_blk=8)
    jax.block_until_ready((x2, pos_emb2))

    ref_x2, ref_pe2 = reference(ids2, off2, T2)
    np.testing.assert_allclose(np.asarray(x2), np.asarray(ref_x2), rtol=1e-5, atol=1e-5)
    np.testing.assert_allclose(np.asarray(pos_emb2), np.asarray(ref_pe2), rtol=1e-5, atol=1e-5)

    print("KERNEL_OK")
</pallas_src>

<mosaic_0001>
module attributes {stable_mosaic.version = 11 : i64} {
  func.func @_embed_kernel(%arg0: i32, %arg1: i32, %arg2: memref<128x32xf32, #tpu.memory_space<vmem>>, %arg3: memref<1x8x1xi32, #tpu.memory_space<vmem>>, %arg4: memref<8x32xf32, #tpu.memory_space<vmem>>, %arg5: memref<1x8x32xf32, #tpu.memory_space<vmem>>) attributes {dimension_semantics = [#tpu.dimension_semantics<parallel>, #tpu.dimension_semantics<parallel>], iteration_bounds = array<i64: 1, 2>, scalar_prefetch = 0 : i64, scratch_operands = 0 : i64, tpu.core_type = #tpu.core_type<tc>, window_params = [{pipeline_mode = #tpu.pipeline_mode<synchronous>, transform_indices = @transform_0, window_bounds = array<i64: 128, 32>}, {transform_indices = @transform_1, window_bounds = array<i64: 1, 8, 1>}, {transform_indices = @transform_2, window_bounds = array<i64: 8, 32>}, {transform_indices = @transform_3, window_bounds = array<i64: 1, 8, 32>}]} {
    %c0 = arith.constant 0 : index
    %c0_0 = arith.constant 0 : index
    %0 = vector.load %arg2[%c0, %c0_0] : memref<128x32xf32, #tpu.memory_space<vmem>>, vector<128x32xf32>
    %c0_1 = arith.constant 0 : index
    %c0_2 = arith.constant 0 : index
    %c0_3 = arith.constant 0 : index
    %1 = vector.load %arg3[%c0_1, %c0_2, %c0_3] : memref<1x8x1xi32, #tpu.memory_space<vmem>>, vector<1x8x1xi32>
    %2 = vector.shape_cast %1 : vector<1x8x1xi32> to vector<8x1xi32>
    %3 = tpu.iota {dimensions = array<i32: 1>} : vector<8x128xi32>
    %4 = vector.broadcast %2 : vector<8x1xi32> to vector<8x128xi32>
    %5 = arith.cmpi eq, %3, %4 : vector<8x128xi32>
    %6 = arith.extui %5 : vector<8x128xi1> to vector<8x128xi32>
    %7 = arith.sitofp %6 : vector<8x128xi32> to vector<8x128xf32>
    %cst = arith.constant dense<0.000000e+00> : vector<8x32xf32>
    %8 = tpu.matmul %7, %0, %cst {dimension_numbers = #tpu.dot_dimension_numbers<[1], [0], [0], [1], [0, 0, 1, 1], [], []>} : vector<8x128xf32>, vector<128x32xf32>, vector<8x32xf32> -> vector<8x32xf32>
    %cst_4 = arith.constant 5.65685415 : f32
    %9 = vector.broadcast %cst_4 : f32 to vector<8x32xf32>
    %10 = arith.mulf %8, %9 : vector<8x32xf32>
    %c0_5 = arith.constant 0 : index
    %c0_6 = arith.constant 0 : index
    %11 = vector.load %arg4[%c0_5, %c0_6] : memref<8x32xf32, #tpu.memory_space<vmem>>, vector<8x32xf32>
    %12 = arith.addf %10, %11 : vector<8x32xf32>
    %c0_7 = arith.constant 0 : index
    %c0_8 = arith.constant 0 : index
    %c0_9 = arith.constant 0 : index
    %13 = vector.load %arg5[%c0_7, %c0_8, %c0_9] : memref<1x8x32xf32, #tpu.memory_space<vmem>>, vector<1x8x32xf32>
    %14 = vector.shape_cast %13 : vector<1x8x32xf32> to vector<8x32xf32>
    %15 = vector.shape_cast %12 : vector<8x32xf32> to vector<1x8x32xf32>
    tpu.vector_store %arg5[%c0_7, %c0_8, %c0_9], %15 {strides = array<i32>} : memref<1x8x32xf32, #tpu.memory_space<vmem>>, vector<1x8x32xf32>,
    return
  }
  func.func @transform_0(%arg0: i32, %arg1: i32) -> (i32, i32) {
    %c0_i32 = arith.constant 0 : i32
    %c0_i32_0 = arith.constant 0 : i32
    %c0_i32_1 = arith.constant 0 : i32
    return %c0_i32, %c0_i32_0 : i32, i32
  }
  func.func @transform_1(%arg0: i32, %arg1: i32) -> (i32, i32, i32) {
    %c0_i32 = arith.constant 0 : i32
    %c0_i32_0 = arith.constant 0 : i32
    return %arg1, %arg0, %c0_i32 : i32, i32, i32
  }
  func.func @transform_2(%arg0: i32, %arg1: i32) -> (i32, i32) {
    %c0_i32 = arith.constant 0 : i32
    %c0_i32_0 = arith.constant 0 : i32
    return %arg0, %c0_i32 : i32, i32
  }
  func.func @transform_3(%arg0: i32, %arg1: i32) -> (i32, i32, i32) {
    %c0_i32 = arith.constant 0 : i32
    %c0_i32_0 = arith.constant 0 : i32
    return %arg1, %arg0, %c0_i32 : i32, i32, i32
  }
}

module attributes {stable_mosaic.version = 11 : i64} {
  func.func @_embed_kernel(%arg0: i32, %arg1: i32, %arg2: memref<128x32xf32, #tpu.memory_space<vmem>>, %arg3: memref<1x8x1xi32, #tpu.memory_space<vmem>>, %arg4: memref<8x32xf32, #tpu.memory_space<vmem>>, %arg5: memref<1x8x32xf32, #tpu.memory_space<vmem>>) attributes {dimension_semantics = [#tpu.dimension_semantics<parallel>, #tpu.dimension_semantics<parallel>], iteration_bounds = array<i64: 1, 2>, scalar_prefetch = 0 : i64, scratch_operands = 0 : i64, tpu.core_type = #tpu.core_type<tc>, window_params = [{pipeline_mode = #tpu.pipeline_mode<synchronous>, transform_indices = @transform_0, window_bounds = array<i64: 128, 32>}, {transform_indices = @transform_1, window_bounds = array<i64: 1, 8, 1>}, {transform_indices = @transform_2, window_bounds = array<i64: 8, 32>}, {transform_indices = @transform_3, window_bounds = array<i64: 1, 8, 32>}]} {
    %c0 = arith.constant 0 : index
    %c0_0 = arith.constant 0 : index
    %0 = vector.load %arg2[%c0, %c0_0] : memref<128x32xf32, #tpu.memory_space<vmem>>, vector<128x32xf32>
    %c0_1 = arith.constant 0 : index
    %c0_2 = arith.constant 0 : index
    %c0_3 = arith.constant 0 : index
    %1 = vector.load %arg3[%c0_1, %c0_2, %c0_3] : memref<1x8x1xi32, #tpu.memory_space<vmem>>, vector<1x8x1xi32>
    %2 = vector.shape_cast %1 : vector<1x8x1xi32> to vector<8x1xi32>
    %3 = tpu.iota {dimensions = array<i32: 1>} : vector<8x128xi32>
    %4 = vector.broadcast %2 : vector<8x1xi32> to vector<8x128xi32>
    %5 = arith.cmpi eq, %3, %4 : vector<8x128xi32>
    %6 = arith.extui %5 : vector<8x128xi1> to vector<8x128xi32>
    %7 = arith.sitofp %6 : vector<8x128xi32> to vector<8x128xf32>
    %cst = arith.constant dense<0.000000e+00> : vector<8x32xf32>
    %8 = tpu.matmul %7, %0, %cst {dimension_numbers = #tpu.dot_dimension_numbers<[1], [0], [0], [1], [0, 0, 1, 1], [], []>} : vector<8x128xf32>, vector<128x32xf32>, vector<8x32xf32> -> vector<8x32xf32>
    %cst_4 = arith.constant 5.65685415 : f32
    %9 = vector.broadcast %cst_4 : f32 to vector<8x32xf32>
    %10 = arith.mulf %8, %9 : vector<8x32xf32>
    %c0_5 = arith.constant 0 : index
    %c0_6 = arith.constant 0 : index
    %11 = vector.load %arg4[%c0_5, %c0_6] : memref<8x32xf32, #tpu.memory_space<vmem>>, vector<8x32xf32>
    %12 = arith.addf %10, %11 : vector<8x32xf32>
    %c0_7 = arith.constant 0 : index
    %c0_8 = arith.constant 0 : index
    %c0_9 = arith.constant 0 : index
    %13 = vector.load %arg5[%c0_7, %c0_8, %c0_9] : memref<1x8x32xf32, #tpu.memory_space<vmem>>, vector<1x8x32xf32>
    %14 = vector.shape_cast %13 : vector<1x8x32xf32> to vector<8x32xf32>
    %15 = vector.shape_cast %12 : vector<8x32xf32> to vector<1x8x32xf32>
    tpu.vector_store %arg5[%c0_7, %c0_8, %c0_9], %15 {strides = array<i32>} : memref<1x8x32xf32, #tpu.memory_space<vmem>>, vector<1x8x32xf32>,
    return
  }
  func.func @transform_0(%arg0: i32, %arg1: i32) -> (i32, i32) {
    %c0_i32 = arith.constant 0 : i32
    %c0_i32_0 = arith.constant 0 : i32
    %c0_i32_1 = arith.constant 0 : i32
    return %c0_i32, %c0_i32_0 : i32, i32
  }
  func.func @transform_1(%arg0: i32, %arg1: i32) -> (i32, i32, i32) {
    %c0_i32 = arith.constant 0 : i32
    %c0_i32_0 = arith.constant 0 : i32
    return %arg1, %arg0, %c0_i32 : i32, i32, i32
  }
  func.func @transform_2(%arg0: i32, %arg1: i32) -> (i32, i32) {
    %c0_i32 = arith.constant 0 : i32
    %c0_i32_0 = arith.constant 0 : i32
    return %arg0, %c0_i32 : i32, i32
  }
  func.func @transform_3(%arg0: i32, %arg1: i32) -> (i32, i32, i32) {
    %c0_i32 = arith.constant 0 : i32
    %c0_i32_0 = arith.constant 0 : i32
    return %arg1, %arg0, %c0_i32 : i32, i32, i32
  }
}

</mosaic_0001>

<bundles_post_ra>
// kernel: tpu_custom_call.1
= control target key start
LH: loop header
LB: loop body
LE: loop exit
PB: predicated region body
PF: predicated region fallthrough
CT: control target
= control target key end

     0   :  { %8 = vsyncpa [#allocation3], 0  ;;  %s829_s0 = inlined_call_operand.vmem [shape: f32[128,32], index: 0, kind: input, shape index: {}]   ;;  %s830_s1 = inlined_call_operand.vmem [shape: s32[2,8,1], index: 1, kind: input, shape index: {}]   ;;  %s831_s2 = inlined_call_operand.vmem [shape: f32[8,32], index: 2, kind: input, shape index: {}]   ;;  %s832_s3 = inlined_call_operand.hbm [shape: f32[2,8,32], index: 3, kind: output, shape index: {}]  }
   0x1   :  { %10 = vsyncpa [#allocation3 + $0x1], 0  ;;  %s666_s12 = smov 0   ;;  %s668_s13 = smov 0  }
   0x2   :  { %s670_s14 = smov 0   ;;  %s672_s15 = smov 0  }
   0x3   :  { %s674_s16 = smov 0   ;;  %s676_s17 = smov 0  }
   0x4 LB: > { %s409_s18 = sadd.s32 4294967295, %s638_s17   ;;  %s410_s19 = sadd.s32 4294967294, %s638_s17   ;;  %s638_s17 = sphi %s676_s17, %s16_s17   ;;  %s634_s16 = sphi %s674_s16, %s839_s16   ;;  %s630_s15 = sphi %s672_s15, %s838_s15   ;;  %s626_s14 = sphi %s670_s14, %s837_s14   ;;  %s622_s13 = sphi %s668_s13, %s836_s13   ;;  %s618_s12 = sphi %s666_s12, %s835_s12  }
   0x5   : > { %s25_s20 = sadd.s32 1, %s634_s16  ;;  %s112_s21 = sadd.s32 1, %s626_s14 }
   0x6   : > { %p26_p0 = scmp.ge.s32.totalorder %s25_s20, 2  ;;  %p122_p1 = scmp.ne.s32.totalorder %s626_s14, %s622_s13 }
   0x7   : > { %p123_p2 = scmp.eq.s32.totalorder %s409_s18, 1  ;;  %p128_p3 = scmp.ne.s32.totalorder %s622_s13, %s618_s12 }
   0x8   : > { %s841_s20 = smov (%p26_p0, %s25_s20), 0  ;;  %p129_p5 = scmp.eq.s32.totalorder %s410_s19, 1 }
   0x9   : > { %p706_p4 = por %p123_p2, %p122_p1  ;;  %s107_s23 = ssub.s32 %s634_s16, %s841_s20 }
   0xa   : > { %p414_p6 = scmp.ge.s32.totalorder %s638_s17, 1  ;;  %p110_p7 = scmp.eq.s32.totalorder %s107_s23, 0 }
   0xb   : > { %p713_p8 = por %p129_p5, %p128_p3  ;;  %p167_p9 = scmp.lt.s32.totalorder %s638_s17, 3 }
   0xc   : > { %s719_s25 = scalar_select %p110_p7, %s626_s14, %s112_s21  }
   0xd   : > { %p168_p10 = pnand %p414_p6, %p167_p9 }
   0xe   : > { %p197_p11 = scmp.lt.s32.totalorder (!%p168_p10), %s630_s15, 1  ;;  %v208_v0 = vld [vmem:[%s829_s0] sm:$0xff] (!%p168_p10)  ;;  %v209_v1 = vld [vmem:[%s829_s0 + $0x8] sm:$0xff] (!%p168_p10)  ;;  %v210_v2 = vld [vmem:[%s829_s0 + $0x10] sm:$0xff] (!%p168_p10)  ;;  %v640_v3 = vmov (!%p168_p10), 0   ;;  %v641_v4 = vmov (!%p168_p10), 0.0|0.0   ;;  %v225_v28 = vlaneseq (!%p168_p10) }
   0xf   : > { %171 = sbr.rel (%p168_p10) target bundleno = 386 (0x182), region = 32  ;;  %559 = vset.pattern.permute.xlu0 (!%p168_p10), %v640_v3  ;;  %475 = vmatprep.subr.bf16.mxu0 (!%p168_p10), %v641_v4  ;;  %v476_v5 = vpack.c.bf16 (!%p168_p10), %v209_v1, %v208_v0  ;;  %v211_v6 = vld [vmem:[%s829_s0 + $0x18] sm:$0xff] (!%p168_p10)  ;;  %v212_v8 = vld [vmem:[%s829_s0 + $0x20] sm:$0xff] (!%p168_p10)  ;;  %v213_v9 = vld [vmem:[%s829_s0 + $0x28] sm:$0xff] (!%p168_p10)  ;;  %vm642_vm0 = vmmov (!%p168_p10), 0   ;;  %v643_v14 = vmov (!%p168_p10), 0.0  }
  0x10   : > { %v479_v7 = vpack.c.bf16 (!%p168_p10), %v211_v6, %v210_v2  ;;  %v482_v11 = vpack.c.bf16 (!%p168_p10), %v213_v9, %v212_v8  ;;  %v214_v12 = vld [vmem:[%s829_s0 + $0x30] sm:$0xff] (!%p168_p10)  ;;  %v215_v13 = vld [vmem:[%s829_s0 + $0x38] sm:$0xff] (!%p168_p10)  ;;  %472 = vmatprep.mubr.msk.f32.mxu0 (!%p168_p10), %vm642_vm0, %v643_v14  ;;  %v216_v16 = vld [vmem:[%s829_s0 + $0x40] sm:$0xff] (!%p168_p10)  ;;  %v226_v29 = vand.u32 (!%p168_p10), 127, %v225_v28  ;;  %v644_v31 = vmov (!%p168_p10), 1.0   ;;  %s194_s29 = sand.u32 (!%p168_p10), 1, %s622_s13  }
  0x11   : > { %477 = vmatpush3.bf16.msra.mxu0 (!%p168_p10), %v476_v5  ;;  %v485_v15 = vpack.c.bf16 (!%p168_p10), %v215_v13, %v214_v12  ;;  %v217_v17 = vld [vmem:[%s829_s0 + $0x48] sm:$0xff] (!%p168_p10)  ;;  %v218_v19 = vld [vmem:[%s829_s0 + $0x50] sm:$0xff] (!%p168_p10)  ;;  %v219_v20 = vld [vmem:[%s829_s0 + $0x58] sm:$0xff] (!%p168_p10)  ;;  %s415_s30 = sshll.u32 (!%p168_p10), %s194_s29, 3  ;;  %s420_s6 = sshll.u32 (!%p168_p10), %s630_s15, 7  ;;  %vm306_vm2 = vcmask (!%p168_p10), 261120  }
  0x12   : > { %478 = vmatprep.subr.bf16.mxu0 (!%p168_p10), %v641_v4  ;;  %v488_v18 = vpack.c.bf16 (!%p168_p10), %v217_v17, %v216_v16  ;;  %v491_v21 = vpack.c.bf16 (!%p168_p10), %v219_v20, %v218_v19  ;;  %v220_v22 = vld [vmem:[%s829_s0 + $0x60] sm:$0xff] (!%p168_p10)  ;;  %v221_v23 = vld [vmem:[%s829_s0 + $0x68] sm:$0xff] (!%p168_p10)  ;;  %v222_v25 = vld [vmem:[%s829_s0 + $0x70] sm:$0xff] (!%p168_p10)  ;;  %s782_s11 = scalar_lea.hbm (!%p168_p10), %s832_s3, %s420_s6  ;;  %s309_s18 = scalar_lea.sflag (!%p168_p10), [#allocation3], %s194_s29 }
  0x13   : > { %v494_v24 = vpack.c.bf16 (!%p168_p10), %v221_v23, %v220_v22  ;;  %v223_v26 = vld [vmem:[%s829_s0 + $0x78] sm:$0xff] (!%p168_p10)  ;;  %v304_v33 = vld [vmem:[%s831_s2] sm:$0xff] (!%p168_p10) }
  0x14   : > { %v497_v27 = vpack.c.bf16 (!%p168_p10), %v223_v26, %v222_v25 }
  0x15   : > { %480 = vmatpush3.bf16.msra.mxu0 (!%p168_p10), %v479_v7 }
  0x16   : > { %s198_s7 = scalar_select %p197_p11, %s630_s15, 1  ;;  %481 = vmatprep.subr.bf16.mxu0 %v641_v4 }
  0x17   : > { %s645_s15 = smov [#allocation2]  }
  0x18   : > { %s416_s8 = sshll.u32 %s198_s7, 3  ;;  %s196_s7 = scalar_lea.vmem [#allocation2], %s415_s30 }
  0x19   : > { %s203_s23 = scalar_lea.vmem %s830_s1, %s416_s8  ;;  %483 = vmatpush3.bf16.msra.mxu0 %v482_v11  ;;  %s323_s8 = sshll.u32 %s196_s7, 4  ;;  %s784_s8 = int_to_ptr.vmem [resolvable:$true] %s323_s8 }
  0x1a   : > { %v224_v10 = vld [vmem:[%s203_s23] sm:$0xff]  ;;  %484 = vmatprep.subr.bf16.mxu0 %v641_v4  ;;  %s560_s19 = scalar_lea.vmem %s784_s8, 128  ;;  %s564_s21 = sshll.u32 %s645_s15, 4  ;;  %s565_s21 = int_to_ptr.vmem [resolvable:$false] %s564_s21 }
  0x1b   : > { %228 = vperm.xlu0 %559, %v224_v10   ;;  %p561_p12 = scmp.ne.s32.totalorder %s784_s8, %s560_s19  ;;  %s566_s23 = scalar_lea.vmem %s565_s21, 256 }
  0x1c   : > { %p567_p1 = scmp.lt.s32.totalorder %s784_s8, %s565_s21  ;;  %p568_p2 = scmp.lt.s32.totalorder %s566_s23, %s560_s19 }
  0x1d   : > { %486 = vmatpush3.bf16.msra.mxu0 %v485_v15  ;;  %p562_p13 = pnand %p561_p12, %p706_p4 }
  0x1e   : > { %487 = vmatprep.subr.bf16.mxu0 %v641_v4  ;;  %p569_p3 = por %p568_p2, %p567_p1 }
  0x1f   : > { %p563_p0 = pneg %p562_p13 }
  0x21   : > { %489 = vmatpush3.bf16.msra.mxu0 %v488_v18  ;;  %p570_p5 = pnand %p569_p3, %p563_p0 }
  0x22   : > { %490 = vmatprep.subr.bf16.mxu0 %v641_v4 }
  0x25   : > { %492 = vmatpush3.bf16.msra.mxu0 %v491_v21 }
  0x26   : > { %493 = vmatprep.subr.bf16.mxu0 %v641_v4 }
  0x29   : > { %495 = vmatpush3.bf16.msra.mxu0 %v494_v24 }
  0x2a   : > { %496 = vmatprep.subr.bf16.mxu0 %v641_v4 }
  0x2d   : > { %498 = vmatpush3.bf16.msra.mxu0 %v497_v27 }
  0x9a   : > { %v229_v30 = vpop.permute.xlu0 %228 }
  0x9b   : > { %vm230_vm1 = vcmp.eq.s32.totalorder %v226_v29, %v229_v30 }
  0x9c   : > { %473 = vmatmul.mubr.msk.f32.vlgmr.msra.gmra.mrb[0].mxu0 %vm230_vm1, %v644_v31 }
 0x16f   : > { %v299_v32 = vpop.f32.mrb[0].mxu0 }
 0x170   : > { %v303_v34 = vmul.f32 5.656854, %v299_v32  ;;  %v474_v35 = vpop.f32.mrb[1].mxu0 }
 0x172   : > { %v305_v36 = vadd.f32 %v304_v33, %v303_v34 }
 0x174   : > { %307 = vst.msk [vmem:[%s196_s7] sm:$0xff] %vm306_vm2, %v305_v36 }
 0x175   : > { %573 = shalt.err (!%p570_p5)
}
 0x176   : > { %s574_s26 = scalar_lea.hbm %s782_s11, 128  ;;  %s578_s29 = scalar_lea.hbm %s832_s3, 256 }
 0x177   : > { %p575_p6 = scmp.ne.s32.totalorder %s782_s11, %s574_s26  ;;  %p579_p10 = scmp.lt.u32.totalorder %s782_s11, %s832_s3 }
 0x178   : > { %p580_p11 = scmp.lt.u32.totalorder %s578_s29, %s574_s26  ;;  %p582_p13 = scmp.lt.u32.totalorder %s574_s26, %s782_s11 }
 0x179   : > { %p576_p7 = pnand %p575_p6, %p706_p4 }
 0x17a   : > { %p581_p12 = por %p580_p11, %p579_p10 }
 0x17b   : > { %p577_p9 = pneg %p576_p7 }
 0x17c   : > { %p583_p0 = por %p582_p13, %p581_p12 }
 0x17e   : > { %p584_p1 = pnand %p583_p0, %p577_p9 }
 0x180   : > { %587 = shalt.err (!%p584_p1)
}
 0x181   : > { %499 = dma.vmem_to_hbm [thread:$0]  (%p706_p4), %s784_s8, 128, %s782_s11, %s309_s18  }
 0x182 PF: > { %p505_p2 = scmp.ge.s32.totalorder %s638_s17, 2  ;;  %s335_s5 = sand.u32 1, %s618_s12  }
 0x183   : > { %s336_s6 = scalar_lea.sflag [#allocation3], %s335_s5 }
 0x184   : > { %p502_p3 = pnand %p505_p2, %p713_p8 }
 0x186   : > { %613 = dma.done.wait (!%p502_p3), %s336_s6, 128  }
 0x187   : > { %615 = vsyncadd (!%p502_p3), %s336_s6, 4294967168  ;;  %s16_s17 = sadd.s32 1, %s638_s17   ;;  %s835_s12 = smov %s622_s13 }
 0x188   : > { %p13_p5 = scmp.ge.s32.totalorder %s16_s17, 4   ;;  %s836_s13 = smov %s626_s14 }
 0x189   : > { %s837_s14 = smov %s719_s25  ;;  %s838_s15 = smov %s634_s16 }
 0x18a   : > { %s839_s16 = smov %s841_s20  ;;  %15 = sbr.rel (!%p13_p5) target bundleno = 4 (0x4), region = 70 }
 0x191   :  { %341 = vsyncpa [#allocation3], 1 }
 0x192   :  { %343 = vsyncpa [#allocation3 + $0x1], 1 }

// kernel: tpu_custom_call.1
= control target key start
LH: loop header
LB: loop body
LE: loop exit
PB: predicated region body
PF: predicated region fallthrough
CT: control target
= control target key end

     0   :  { %8 = vsyncpa [#allocation3], 0  ;;  %s829_s0 = inlined_call_operand.vmem [shape: f32[128,32], index: 0, kind: input, shape index: {}]   ;;  %s830_s1 = inlined_call_operand.vmem [shape: s32[2,8,1], index: 1, kind: input, shape index: {}]   ;;  %s831_s2 = inlined_call_operand.vmem [shape: f32[8,32], index: 2, kind: input, shape index: {}]   ;;  %s832_s3 = inlined_call_operand.hbm [shape: f32[2,8,32], index: 3, kind: output, shape index: {}]  }
   0x1   :  { %10 = vsyncpa [#allocation3 + $0x1], 0  ;;  %s666_s12 = smov 0   ;;  %s668_s13 = smov 0  }
   0x2   :  { %s670_s14 = smov 0   ;;  %s672_s15 = smov 0  }
   0x3   :  { %s674_s16 = smov 0   ;;  %s676_s17 = smov 0  }
   0x4 LB: > { %s409_s18 = sadd.s32 4294967295, %s638_s17   ;;  %s410_s19 = sadd.s32 4294967294, %s638_s17   ;;  %s638_s17 = sphi %s676_s17, %s16_s17   ;;  %s634_s16 = sphi %s674_s16, %s839_s16   ;;  %s630_s15 = sphi %s672_s15, %s838_s15   ;;  %s626_s14 = sphi %s670_s14, %s837_s14   ;;  %s622_s13 = sphi %s668_s13, %s836_s13   ;;  %s618_s12 = sphi %s666_s12, %s835_s12  }
   0x5   : > { %s25_s20 = sadd.s32 1, %s634_s16  ;;  %s112_s21 = sadd.s32 1, %s626_s14 }
   0x6   : > { %p26_p0 = scmp.ge.s32.totalorder %s25_s20, 2  ;;  %p122_p1 = scmp.ne.s32.totalorder %s626_s14, %s622_s13 }
   0x7   : > { %p123_p2 = scmp.eq.s32.totalorder %s409_s18, 1  ;;  %p128_p3 = scmp.ne.s32.totalorder %s622_s13, %s618_s12 }
   0x8   : > { %s841_s20 = smov (%p26_p0, %s25_s20), 0  ;;  %p129_p5 = scmp.eq.s32.totalorder %s410_s19, 1 }
   0x9   : > { %p706_p4 = por %p123_p2, %p122_p1  ;;  %s107_s23 = ssub.s32 %s634_s16, %s841_s20 }
   0xa   : > { %p414_p6 = scmp.ge.s32.totalorder %s638_s17, 1  ;;  %p110_p7 = scmp.eq.s32.totalorder %s107_s23, 0 }
   0xb   : > { %p713_p8 = por %p129_p5, %p128_p3  ;;  %p167_p9 = scmp.lt.s32.totalorder %s638_s17, 3 }
   0xc   : > { %s719_s25 = scalar_select %p110_p7, %s626_s14, %s112_s21  }
   0xd   : > { %p168_p10 = pnand %p414_p6, %p167_p9 }
   0xe   : > { %p197_p11 = scmp.lt.s32.totalorder (!%p168_p10), %s630_s15, 1  ;;  %v208_v0 = vld [vmem:[%s829_s0] sm:$0xff] (!%p168_p10)  ;;  %v209_v1 = vld [vmem:[%s829_s0 + $0x8] sm:$0xff] (!%p168_p10)  ;;  %v210_v2 = vld [vmem:[%s829_s0 + $0x10] sm:$0xff] (!%p168_p10)  ;;  %v640_v3 = vmov (!%p168_p10), 0   ;;  %v641_v4 = vmov (!%p168_p10), 0.0|0.0   ;;  %v225_v28 = vlaneseq (!%p168_p10) }
   0xf   : > { %171 = sbr.rel (%p168_p10) target bundleno = 386 (0x182), region = 32  ;;  %559 = vset.pattern.permute.xlu0 (!%p168_p10), %v640_v3  ;;  %475 = vmatprep.subr.bf16.mxu0 (!%p168_p10), %v641_v4  ;;  %v476_v5 = vpack.c.bf16 (!%p168_p10), %v209_v1, %v208_v0  ;;  %v211_v6 = vld [vmem:[%s829_s0 + $0x18] sm:$0xff] (!%p168_p10)  ;;  %v212_v8 = vld [vmem:[%s829_s0 + $0x20] sm:$0xff] (!%p168_p10)  ;;  %v213_v9 = vld [vmem:[%s829_s0 + $0x28] sm:$0xff] (!%p168_p10)  ;;  %vm642_vm0 = vmmov (!%p168_p10), 0   ;;  %v643_v14 = vmov (!%p168_p10), 0.0  }
  0x10   : > { %v479_v7 = vpack.c.bf16 (!%p168_p10), %v211_v6, %v210_v2  ;;  %v482_v11 = vpack.c.bf16 (!%p168_p10), %v213_v9, %v212_v8  ;;  %v214_v12 = vld [vmem:[%s829_s0 + $0x30] sm:$0xff] (!%p168_p10)  ;;  %v215_v13 = vld [vmem:[%s829_s0 + $0x38] sm:$0xff] (!%p168_p10)  ;;  %472 = vmatprep.mubr.msk.f32.mxu0 (!%p168_p10), %vm642_vm0, %v643_v14  ;;  %v216_v16 = vld [vmem:[%s829_s0 + $0x40] sm:$0xff] (!%p168_p10)  ;;  %v226_v29 = vand.u32 (!%p168_p10), 127, %v225_v28  ;;  %v644_v31 = vmov (!%p168_p10), 1.0   ;;  %s194_s29 = sand.u32 (!%p168_p10), 1, %s622_s13  }
  0x11   : > { %477 = vmatpush3.bf16.msra.mxu0 (!%p168_p10), %v476_v5  ;;  %v485_v15 = vpack.c.bf16 (!%p168_p10), %v215_v13, %v214_v12  ;;  %v217_v17 = vld [vmem:[%s829_s0 + $0x48] sm:$0xff] (!%p168_p10)  ;;  %v218_v19 = vld [vmem:[%s829_s0 + $0x50] sm:$0xff] (!%p168_p10)  ;;  %v219_v20 = vld [vmem:[%s829_s0 + $0x58] sm:$0xff] (!%p168_p10)  ;;  %s415_s30 = sshll.u32 (!%p168_p10), %s194_s29, 3  ;;  %s420_s6 = sshll.u32 (!%p168_p10), %s630_s15, 7  ;;  %vm306_vm2 = vcmask (!%p168_p10), 261120  }
  0x12   : > { %478 = vmatprep.subr.bf16.mxu0 (!%p168_p10), %v641_v4  ;;  %v488_v18 = vpack.c.bf16 (!%p168_p10), %v217_v17, %v216_v16  ;;  %v491_v21 = vpack.c.bf16 (!%p168_p10), %v219_v20, %v218_v19  ;;  %v220_v22 = vld [vmem:[%s829_s0 + $0x60] sm:$0xff] (!%p168_p10)  ;;  %v221_v23 = vld [vmem:[%s829_s0 + $0x68] sm:$0xff] (!%p168_p10)  ;;  %v222_v25 = vld [vmem:[%s829_s0 + $0x70] sm:$0xff] (!%p168_p10)  ;;  %s782_s11 = scalar_lea.hbm (!%p168_p10), %s832_s3, %s420_s6  ;;  %s309_s18 = scalar_lea.sflag (!%p168_p10), [#allocation3], %s194_s29 }
  0x13   : > { %v494_v24 = vpack.c.bf16 (!%p168_p10), %v221_v23, %v220_v22  ;;  %v223_v26 = vld [vmem:[%s829_s0 + $0x78] sm:$0xff] (!%p168_p10)  ;;  %v304_v33 = vld [vmem:[%s831_s2] sm:$0xff] (!%p168_p10) }
  0x14   : > { %v497_v27 = vpack.c.bf16 (!%p168_p10), %v223_v26, %v222_v25 }
  0x15   : > { %480 = vmatpush3.bf16.msra.mxu0 (!%p168_p10), %v479_v7 }
  0x16   : > { %s198_s7 = scalar_select %p197_p11, %s630_s15, 1  ;;  %481 = vmatprep.subr.bf16.mxu0 %v641_v4 }
  0x17   : > { %s645_s15 = smov [#allocation2]  }
  0x18   : > { %s416_s8 = sshll.u32 %s198_s7, 3  ;;  %s196_s7 = scalar_lea.vmem [#allocation2], %s415_s30 }
  0x19   : > { %s203_s23 = scalar_lea.vmem %s830_s1, %s416_s8  ;;  %483 = vmatpush3.bf16.msra.mxu0 %v482_v11  ;;  %s323_s8 = sshll.u32 %s196_s7, 4  ;;  %s784_s8 = int_to_ptr.vmem [resolvable:$true] %s323_s8 }
  0x1a   : > { %v224_v10 = vld [vmem:[%s203_s23] sm:$0xff]  ;;  %484 = vmatprep.subr.bf16.mxu0 %v641_v4  ;;  %s560_s19 = scalar_lea.vmem %s784_s8, 128  ;;  %s564_s21 = sshll.u32 %s645_s15, 4  ;;  %s565_s21 = int_to_ptr.vmem [resolvable:$false] %s564_s21 }
  0x1b   : > { %228 = vperm.xlu0 %559, %v224_v10   ;;  %p561_p12 = scmp.ne.s32.totalorder %s784_s8, %s560_s19  ;;  %s566_s23 = scalar_lea.vmem %s565_s21, 256 }
  0x1c   : > { %p567_p1 = scmp.lt.s32.totalorder %s784_s8, %s565_s21  ;;  %p568_p2 = scmp.lt.s32.totalorder %s566_s23, %s560_s19 }
  0x1d   : > { %486 = vmatpush3.bf16.msra.mxu0 %v485_v15  ;;  %p562_p13 = pnand %p561_p12, %p706_p4 }
  0x1e   : > { %487 = vmatprep.subr.bf16.mxu0 %v641_v4  ;;  %p569_p3 = por %p568_p2, %p567_p1 }
  0x1f   : > { %p563_p0 = pneg %p562_p13 }
  0x21   : > { %489 = vmatpush3.bf16.msra.mxu0 %v488_v18  ;;  %p570_p5 = pnand %p569_p3, %p563_p0 }
  0x22   : > { %490 = vmatprep.subr.bf16.mxu0 %v641_v4 }
  0x25   : > { %492 = vmatpush3.bf16.msra.mxu0 %v491_v21 }
  0x26   : > { %493 = vmatprep.subr.bf16.mxu0 %v641_v4 }
  0x29   : > { %495 = vmatpush3.bf16.msra.mxu0 %v494_v24 }
  0x2a   : > { %496 = vmatprep.subr.bf16.mxu0 %v641_v4 }
  0x2d   : > { %498 = vmatpush3.bf16.msra.mxu0 %v497_v27 }
  0x9a   : > { %v229_v30 = vpop.permute.xlu0 %228 }
  0x9b   : > { %vm230_vm1 = vcmp.eq.s32.totalorder %v226_v29, %v229_v30 }
  0x9c   : > { %473 = vmatmul.mubr.msk.f32.vlgmr.msra.gmra.mrb[0].mxu0 %vm230_vm1, %v644_v31 }
 0x16f   : > { %v299_v32 = vpop.f32.mrb[0].mxu0 }
 0x170   : > { %v303_v34 = vmul.f32 5.656854, %v299_v32  ;;  %v474_v35 = vpop.f32.mrb[1].mxu0 }
 0x172   : > { %v305_v36 = vadd.f32 %v304_v33, %v303_v34 }
 0x174   : > { %307 = vst.msk [vmem:[%s196_s7] sm:$0xff] %vm306_vm2, %v305_v36 }
 0x175   : > { %573 = shalt.err (!%p570_p5)
}
 0x176   : > { %s574_s26 = scalar_lea.hbm %s782_s11, 128  ;;  %s578_s29 = scalar_lea.hbm %s832_s3, 256 }
 0x177   : > { %p575_p6 = scmp.ne.s32.totalorder %s782_s11, %s574_s26  ;;  %p579_p10 = scmp.lt.u32.totalorder %s782_s11, %s832_s3 }
 0x178   : > { %p580_p11 = scmp.lt.u32.totalorder %s578_s29, %s574_s26  ;;  %p582_p13 = scmp.lt.u32.totalorder %s574_s26, %s782_s11 }
 0x179   : > { %p576_p7 = pnand %p575_p6, %p706_p4 }
 0x17a   : > { %p581_p12 = por %p580_p11, %p579_p10 }
 0x17b   : > { %p577_p9 = pneg %p576_p7 }
 0x17c   : > { %p583_p0 = por %p582_p13, %p581_p12 }
 0x17e   : > { %p584_p1 = pnand %p583_p0, %p577_p9 }
 0x180   : > { %587 = shalt.err (!%p584_p1)
}
 0x181   : > { %499 = dma.vmem_to_hbm [thread:$0]  (%p706_p4), %s784_s8, 128, %s782_s11, %s309_s18  }
 0x182 PF: > { %p505_p2 = scmp.ge.s32.totalorder %s638_s17, 2  ;;  %s335_s5 = sand.u32 1, %s618_s12  }
 0x183   : > { %s336_s6 = scalar_lea.sflag [#allocation3], %s335_s5 }
 0x184   : > { %p502_p3 = pnand %p505_p2, %p713_p8 }
 0x186   : > { %613 = dma.done.wait (!%p502_p3), %s336_s6, 128  }
 0x187   : > { %615 = vsyncadd (!%p502_p3), %s336_s6, 4294967168  ;;  %s16_s17 = sadd.s32 1, %s638_s17   ;;  %s835_s12 = smov %s622_s13 }
 0x188   : > { %p13_p5 = scmp.ge.s32.totalorder %s16_s17, 4   ;;  %s836_s13 = smov %s626_s14 }
 0x189   : > { %s837_s14 = smov %s719_s25  ;;  %s838_s15 = smov %s634_s16 }
 0x18a   : > { %s839_s16 = smov %s841_s20  ;;  %15 = sbr.rel (!%p13_p5) target bundleno = 4 (0x4), region = 70 }
 0x191   :  { %341 = vsyncpa [#allocation3], 1 }
 0x192   :  { %343 = vsyncpa [#allocation3 + $0x1], 1 }

</bundles_post_ra>
